<compile_context>
chip_gen: v7x
topology: tpu7x:2x2x1
jax: 0.10.0
libtpu: 0.0.40
codegen_flags: <defaults>
</compile_context>

<pallas_src>
import math

import jax
import jax.numpy as jnp
from jax.experimental import pallas as pl
from jax.experimental.pallas import tpu as pltpu


def _round_up(v, m):
    return (v + m - 1) // m * m


def _feature_concat_kernel(x_ref, w_ref, o_ref):
    # x_ref: [TILE_G, G*F] int32 indices, pre-offset by feature and by group lane.
    # w_ref: [G*D_pad, G*H] float32 block-diagonal folded tables (bias folded in).
    # o_ref: [TILE_G, G*H] float32 (lane-dense: G*H is a multiple of 128 when possible).
    tile_g, ncols = x_ref.shape
    k = w_ref.shape[0]

    idx = x_ref[...]
    lane = jax.lax.broadcasted_iota(jnp.int32, (tile_g, k), 1)  # single iota, hoisted

    # Each of the G*F index columns hits a disjoint lane range, so OR-ing the
    # per-column compares builds the combined one-hot exactly.
    hit = lane == idx[:, 0:1]
    for c in range(1, ncols):  # unrolled at trace time; G*F is small
        hit = jnp.logical_or(hit, lane == idx[:, c:c + 1])
    onehot = hit.astype(jnp.float32)

    # Embedding lookup + concat + projection + bias in a single MXU matmul.
    o_ref[...] = jnp.dot(onehot, w_ref[...], preferred_element_type=jnp.float32)


def feature_concat_encoder(x, emb_tables, proj_w, proj_b, *, tile_rows=2048):
    """x: int [..., F]; emb_tables: list of [dim_f, H]; proj_w: [H, F*H]
    (PyTorch nn.Linear layout); proj_b: [H].  Returns float32 [..., H]."""
    num_features = x.shape[-1]
    assert num_features == len(emb_tables)
    hidden = emb_tables[0].shape[1]
    assert proj_w.shape == (hidden, num_features * hidden)

    dims = [int(t.shape[0]) for t in emb_tables]
    d_total = sum(dims)

    # ---- wrapper-side algebra: fold W (and bias) into the embedding tables ----
    folded = []
    for f in range(num_features):
        w_f = proj_w[:, f * hidden:(f + 1) * hidden].T.astype(jnp.float32)   # [H, H]
        folded.append(emb_tables[f].astype(jnp.float32) @ w_f)               # [dim_f, H]
    folded[0] = folded[0] + proj_b.astype(jnp.float32)[None, :]              # exact bias fold
    folded_all = jnp.concatenate(folded, axis=0)                             # [D_total, H]

    # ---- lane-dense grouping: pack G rows per output row so G*H % 128 == 0 ----
    if hidden % 128 == 0:
        group = 1
        d_pad = _round_up(d_total, 8)
    elif 128 % hidden == 0:
        group = 128 // hidden
        d_pad = _round_up(d_total, 128 // group)   # K = G*D_pad becomes a multiple of 128
    else:
        group = 1                                  # correct fallback, just not lane-dense
        d_pad = _round_up(d_total, 8)

    folded_pad = jnp.zeros((d_pad, hidden), jnp.float32).at[:d_total].set(folded_all)
    w_block = jnp.kron(jnp.eye(group, dtype=jnp.float32), folded_pad)        # [G*D_pad, G*H]

    # ---- index preparation: feature offsets + per-group lane offsets ----
    lead = x.shape[:-1]
    n = math.prod(lead) if lead else 1
    x2d = x.reshape(n, num_features).astype(jnp.int32)

    n_grp = -(-n // group)                                     # cdiv
    tile_g = min(_round_up(max(8, tile_rows // group), 8),     # ~tile_rows rows per tile
                 _round_up(n_grp, 8))                          # don't over-pad tiny inputs
    n_grp_pad = _round_up(n_grp, tile_g)
    n_pad = n_grp_pad * group

    feat_off = jnp.array([sum(dims[:f]) for f in range(num_features)], jnp.int32)
    x_padded = jnp.zeros((n_pad, num_features), jnp.int32).at[:n].set(x2d)   # pad rows: valid idx 0
    x_adj = x_padded + feat_off[None, :]
    grp_off = (jnp.arange(group, dtype=jnp.int32) * d_pad)[None, :, None]
    x_grp = (x_adj.reshape(n_grp_pad, group, num_features) + grp_off
             ).reshape(n_grp_pad, group * num_features)

    grid = (n_grp_pad // tile_g,)
    out_w = group * hidden
    k_dim = group * d_pad

    flops = 2 * n_grp_pad * k_dim * out_w
    bytes_accessed = (x_grp.size * 4 + n_grp_pad * out_w * 4 + w_block.size * 4)

    out_grp = pl.pallas_call(
        _feature_concat_kernel,
        out_shape=jax.ShapeDtypeStruct((n_grp_pad, out_w), jnp.float32),
        grid_spec=pltpu.PrefetchScalarGridSpec(
            num_scalar_prefetch=0,
            grid=grid,
            in_specs=[
                pl.BlockSpec((tile_g, group * num_features), lambda i: (i, 0)),
                pl.BlockSpec((k_dim, out_w), lambda i: (0, 0)),  # resident folded RHS
            ],
            out_specs=pl.BlockSpec((tile_g, out_w), lambda i: (i, 0)),
        ),
        compiler_params=pltpu.CompilerParams(
            dimension_semantics=("parallel",),      # shard N tiles across v7x's 2 TCs
            vmem_limit_bytes=32 * 1024 * 1024,      # far above the ~1.5 MiB/tile actually used
        ),
        cost_estimate=pl.CostEstimate(
            flops=flops, transcendentals=0, bytes_accessed=bytes_accessed),
    )(x_grp, w_block)

    # Row-major [n_grp_pad, G*H] is byte-identical to [n_pad, H]: free reshape.
    out = out_grp.reshape(n_pad, hidden)[:n]
    return out.reshape(*lead, hidden)


if __name__ == "__main__":
    feature_dims = [7, 5, 11]       # F == 3
    hidden_size = 32
    F = len(feature_dims)

    key = jax.random.PRNGKey(0)
    keys = jax.random.split(key, F + 3)

    # Deterministic parameter init (shapes match nn.Embedding / nn.Linear).
    emb_tables = [
        jax.random.normal(keys[i], (feature_dims[i], hidden_size), jnp.float32)
        for i in range(F)
    ]
    fan_in = F * hidden_size
    bound = 1.0 / math.sqrt(fan_in)
    proj_w = jax.random.uniform(keys[F], (hidden_size, fan_in),
                                jnp.float32, -bound, bound)
    proj_b = jax.random.uniform(keys[F + 1], (hidden_size,),
                                jnp.float32, -bound, bound)

    # Input: integer feature indices, shape [..., F] = [2, 8, 3].
    x = jnp.stack(
        [jax.random.randint(jax.random.fold_in(keys[F + 2], i), (2, 8),
                            0, feature_dims[i], jnp.int32)
         for i in range(F)],
        axis=-1,
    )

    out = feature_concat_encoder(x, emb_tables, proj_w, proj_b)
    out = jax.block_until_ready(out)

    # Pure-JAX reference (mirrors the PyTorch forward exactly).
    embs = [emb_tables[i][x[..., i]] for i in range(F)]
    ref = jnp.concatenate(embs, axis=-1) @ proj_w.T + proj_b

    assert out.shape == (2, 8, hidden_size)
    assert jnp.allclose(out, ref, atol=1e-4, rtol=1e-4), "mismatch vs reference"
    print("KERNEL_OK")
</pallas_src>

<mosaic_0001>
module attributes {stable_mosaic.version = 11 : i64} {
  func.func @_feature_concat_kernel(%arg0: i32, %arg1: memref<8x12xi32, #tpu.memory_space<vmem>>, %arg2: memref<128x128xf32, #tpu.memory_space<vmem>>, %arg3: memref<8x128xf32, #tpu.memory_space<vmem>>) attributes {dimension_semantics = [#tpu.dimension_semantics<parallel>], iteration_bounds = array<i64: 1>, scalar_prefetch = 0 : i64, scratch_operands = 0 : i64, tpu.core_type = #tpu.core_type<tc>, window_params = [{transform_indices = @transform_0, window_bounds = array<i64: 8, 12>}, {pipeline_mode = #tpu.pipeline_mode<synchronous>, transform_indices = @transform_1, window_bounds = array<i64: 128, 128>}, {transform_indices = @transform_2, window_bounds = array<i64: 8, 128>}]} {
    %c0 = arith.constant 0 : index
    %c0_0 = arith.constant 0 : index
    %0 = vector.load %arg1[%c0, %c0_0] : memref<8x12xi32, #tpu.memory_space<vmem>>, vector<8x12xi32>
    %1 = tpu.iota {dimensions = array<i32: 1>} : vector<8x128xi32>
    %2 = vector.extract_strided_slice %0 {offsets = [0, 0], sizes = [8, 1], strides = [1, 1]} : vector<8x12xi32> to vector<8x1xi32>
    %3 = vector.broadcast %2 : vector<8x1xi32> to vector<8x128xi32>
    %4 = arith.cmpi eq, %1, %3 : vector<8x128xi32>
    %5 = vector.extract_strided_slice %0 {offsets = [0, 1], sizes = [8, 1], strides = [1, 1]} : vector<8x12xi32> to vector<8x1xi32>
    %6 = vector.broadcast %5 : vector<8x1xi32> to vector<8x128xi32>
    %7 = arith.cmpi eq, %1, %6 : vector<8x128xi32>
    %8 = arith.ori %4, %7 : vector<8x128xi1>
    %9 = vector.extract_strided_slice %0 {offsets = [0, 2], sizes = [8, 1], strides = [1, 1]} : vector<8x12xi32> to vector<8x1xi32>
    %10 = vector.broadcast %9 : vector<8x1xi32> to vector<8x128xi32>
    %11 = arith.cmpi eq, %1, %10 : vector<8x128xi32>
    %12 = arith.ori %8, %11 : vector<8x128xi1>
    %13 = vector.extract_strided_slice %0 {offsets = [0, 3], sizes = [8, 1], strides = [1, 1]} : vector<8x12xi32> to vector<8x1xi32>
    %14 = vector.broadcast %13 : vector<8x1xi32> to vector<8x128xi32>
    %15 = arith.cmpi eq, %1, %14 : vector<8x128xi32>
    %16 = arith.ori %12, %15 : vector<8x128xi1>
    %17 = vector.extract_strided_slice %0 {offsets = [0, 4], sizes = [8, 1], strides = [1, 1]} : vector<8x12xi32> to vector<8x1xi32>
    %18 = vector.broadcast %17 : vector<8x1xi32> to vector<8x128xi32>
    %19 = arith.cmpi eq, %1, %18 : vector<8x128xi32>
    %20 = arith.ori %16, %19 : vector<8x128xi1>
    %21 = vector.extract_strided_slice %0 {offsets = [0, 5], sizes = [8, 1], strides = [1, 1]} : vector<8x12xi32> to vector<8x1xi32>
    %22 = vector.broadcast %21 : vector<8x1xi32> to vector<8x128xi32>
    %23 = arith.cmpi eq, %1, %22 : vector<8x128xi32>
    %24 = arith.ori %20, %23 : vector<8x128xi1>
    %25 = vector.extract_strided_slice %0 {offsets = [0, 6], sizes = [8, 1], strides = [1, 1]} : vector<8x12xi32> to vector<8x1xi32>
    %26 = vector.broadcast %25 : vector<8x1xi32> to vector<8x128xi32>
    %27 = arith.cmpi eq, %1, %26 : vector<8x128xi32>
    %28 = arith.ori %24, %27 : vector<8x128xi1>
    %29 = vector.extract_strided_slice %0 {offsets = [0, 7], sizes = [8, 1], strides = [1, 1]} : vector<8x12xi32> to vector<8x1xi32>
    %30 = vector.broadcast %29 : vector<8x1xi32> to vector<8x128xi32>
    %31 = arith.cmpi eq, %1, %30 : vector<8x128xi32>
    %32 = arith.ori %28, %31 : vector<8x128xi1>
    %33 = vector.extract_strided_slice %0 {offsets = [0, 8], sizes = [8, 1], strides = [1, 1]} : vector<8x12xi32> to vector<8x1xi32>
    %34 = vector.broadcast %33 : vector<8x1xi32> to vector<8x128xi32>
    %35 = arith.cmpi eq, %1, %34 : vector<8x128xi32>
    %36 = arith.ori %32, %35 : vector<8x128xi1>
    %37 = vector.extract_strided_slice %0 {offsets = [0, 9], sizes = [8, 1], strides = [1, 1]} : vector<8x12xi32> to vector<8x1xi32>
    %38 = vector.broadcast %37 : vector<8x1xi32> to vector<8x128xi32>
    %39 = arith.cmpi eq, %1, %38 : vector<8x128xi32>
    %40 = arith.ori %36, %39 : vector<8x128xi1>
    %41 = vector.extract_strided_slice %0 {offsets = [0, 10], sizes = [8, 1], strides = [1, 1]} : vector<8x12xi32> to vector<8x1xi32>
    %42 = vector.broadcast %41 : vector<8x1xi32> to vector<8x128xi32>
    %43 = arith.cmpi eq, %1, %42 : vector<8x128xi32>
    %44 = arith.ori %40, %43 : vector<8x128xi1>
    %45 = vector.extract_strided_slice %0 {offsets = [0, 11], sizes = [8, 1], strides = [1, 1]} : vector<8x12xi32> to vector<8x1xi32>
    %46 = vector.broadcast %45 : vector<8x1xi32> to vector<8x128xi32>
    %47 = arith.cmpi eq, %1, %46 : vector<8x128xi32>
    %48 = arith.ori %44, %47 : vector<8x128xi1>
    %49 = arith.extui %48 : vector<8x128xi1> to vector<8x128xi32>
    %50 = arith.sitofp %49 : vector<8x128xi32> to vector<8x128xf32>
    %c0_1 = arith.constant 0 : index
    %c0_2 = arith.constant 0 : index
    %51 = vector.load %arg2[%c0_1, %c0_2] : memref<128x128xf32, #tpu.memory_space<vmem>>, vector<128x128xf32>
    %cst = arith.constant dense<0.000000e+00> : vector<8x128xf32>
    %52 = tpu.matmul %50, %51, %cst {dimension_numbers = #tpu.dot_dimension_numbers<[1], [0], [0], [1], [0, 0, 1, 1], [], []>} : vector<8x128xf32>, vector<128x128xf32>, vector<8x128xf32> -> vector<8x128xf32>
    %c0_3 = arith.constant 0 : index
    %c0_4 = arith.constant 0 : index
    %53 = vector.load %arg3[%c0_3, %c0_4] : memref<8x128xf32, #tpu.memory_space<vmem>>, vector<8x128xf32>
    tpu.vector_store %arg3[%c0_3, %c0_4], %52 {strides = array<i32>} : memref<8x128xf32, #tpu.memory_space<vmem>>, vector<8x128xf32>,
    return
  }
  func.func @transform_0(%arg0: i32) -> (i32, i32) {
    %c0_i32 = arith.constant 0 : i32
    %c0_i32_0 = arith.constant 0 : i32
    return %arg0, %c0_i32 : i32, i32
  }
  func.func @transform_1(%arg0: i32) -> (i32, i32) {
    %c0_i32 = arith.constant 0 : i32
    %c0_i32_0 = arith.constant 0 : i32
    %c0_i32_1 = arith.constant 0 : i32
    return %c0_i32, %c0_i32_0 : i32, i32
  }
  func.func @transform_2(%arg0: i32) -> (i32, i32) {
    %c0_i32 = arith.constant 0 : i32
    %c0_i32_0 = arith.constant 0 : i32
    return %arg0, %c0_i32 : i32, i32
  }
}

</mosaic_0001>

<bundles_post_ra>
// kernel: tpu_custom_call.1
= control target key start
LH: loop header
LB: loop body
LE: loop exit
PB: predicated region body
PF: predicated region fallthrough
CT: control target
= control target key end

     0   :  { %7 = vsyncpa [#allocation3], 0  ;;  %s486_s0 = inlined_call_operand.hbm [shape: s32[8,12], index: 0, kind: input, shape index: {}]   ;;  %s487_s1 = inlined_call_operand.hbm [shape: f32[128,128], index: 1, kind: input, shape index: {}]   ;;  %s488_s2 = inlined_call_operand.hbm [shape: f32[8,128], index: 2, kind: output, shape index: {}]  }
   0x1   :  { %8 = vsyncpa [#allocation6], 0 }
   0x2   :  { %9 = vsyncpa [#allocation4], 0  ;;  %s386_s9 = smov [#allocation2]   ;;  %s387_s11 = smov [#allocation5]  }
   0x3   :  { %s16_s10 = sshll.u32 %s386_s9, 4  ;;  %s25_s12 = sshll.u32 %s387_s11, 4  ;;  %s17_s10 = int_to_ptr.vmem [resolvable:$true] %s16_s10  ;;  %s421_s12 = int_to_ptr.vmem [resolvable:$true] %s25_s12 }
   0x4   :  { %s314_s15 = scalar_lea.hbm %s486_s0, 128 }
   0x5   :  { %p315_p0 = scmp.ne.s32.totalorder %s486_s0, %s314_s15  ;;  %p318_p1 = scmp.lt.u32.totalorder %s314_s15, %s486_s0 }
   0x7   :  { %p320_p2 = pnand %p318_p1, %p315_p0 }
   0x9   :  { %323 = shalt.err (!%p320_p2)
}
   0xa   :  { %s324_s20 = scalar_lea.vmem %s17_s10, 128  ;;  %p329_p4 = scmp.lt.s32.totalorder %s17_s10, %s17_s10 }
   0xb   :  { %p325_p3 = scmp.ne.s32.totalorder %s17_s10, %s324_s20  ;;  %p330_p5 = scmp.lt.s32.totalorder %s324_s20, %s324_s20 }
   0xd   :  { %p331_p6 = por %p330_p5, %p329_p4 }
   0xf   :  { %p332_p7 = pnand %p331_p6, %p325_p3 }
  0x11   :  { %335 = shalt.err (!%p332_p7)
}
  0x12   :  { %19 = dma.hbm_to_vmem [thread:$0]  %s486_s0, 128, %s17_s10, [#allocation3]  }
  0x13   :  { %s336_s25 = scalar_lea.hbm %s487_s1, 2048 }
  0x14   :  { %p337_p8 = scmp.ne.s32.totalorder %s487_s1, %s336_s25  ;;  %p340_p9 = scmp.lt.u32.totalorder %s336_s25, %s487_s1 }
  0x16   :  { %p342_p10 = pnand %p340_p9, %p337_p8 }
  0x18   :  { %345 = shalt.err (!%p342_p10)
}
  0x19   :  { %s346_s30 = scalar_lea.vmem %s421_s12, 2048  ;;  %p351_p12 = scmp.lt.s32.totalorder %s421_s12, %s421_s12 }
  0x1a   :  { %p347_p11 = scmp.ne.s32.totalorder %s421_s12, %s346_s30  ;;  %p352_p13 = scmp.lt.s32.totalorder %s346_s30, %s346_s30 }
  0x1c   :  { %p353_p0 = por %p352_p13, %p351_p12 }
  0x1e   :  { %p354_p1 = pnand %p353_p0, %p347_p11 }
  0x20   :  { %357 = shalt.err (!%p354_p1)
}
  0x21   :  { %s388_s0 = smov 128   ;;  %s389_s3 = smov 8  }
  0x22   :  { %31 = dma.hbm_to_vmem [thread:$0]  %s487_s1, 2048, %s421_s12, [#allocation6], %s388_s0, %s388_s0, %s389_s3  }
  0x23   :  { %380 = dma.done.wait [#allocation3], 128  }
  0x24   :  { %381 = vsyncadd [#allocation3], 4294967168 }
  0x25   :  { %382 = dma.done.wait [#allocation6], 2048  }
  0x26   :  { %383 = vsyncadd [#allocation6], 4294965248  ;;  %v390_v0 = vmov 2   ;;  %v391_v1 = vmov 0   ;;  %v452_v2 = vld [vmem:[#allocation2] sm:$0xff]  ;;  %v102_v3 = vld [vmem:[#allocation5] sm:$0xff]  ;;  %v39_v42 = vlaneseq }
  0x27   :  { %304 = vset.pattern.permute.xlu1 %v390_v0  ;;  %302 = vset.pattern.permute.xlu0 %v391_v1  ;;  %v103_v4 = vld [vmem:[#allocation5 + $0x8] sm:$0xff]  ;;  %v392_v5 = vmov 0.0|0.0   ;;  %v393_v7 = vmov 3   ;;  %v394_v8 = vmov 1   ;;  %v104_v9 = vld [vmem:[#allocation5 + $0x10] sm:$0xff]  ;;  %v105_v10 = vld [vmem:[#allocation5 + $0x18] sm:$0xff] }
  0x28   :  { %51 = vperm.xlu1 %304, %v452_v2   ;;  %42 = vperm.xlu0 %302, %v452_v2   ;;  %v259_v6 = vpack.c.bf16 %v103_v4, %v102_v3  ;;  %v262_v11 = vpack.c.bf16 %v105_v10, %v104_v9  ;;  %v106_v12 = vld [vmem:[#allocation5 + $0x20] sm:$0xff]  ;;  %v107_v13 = vld [vmem:[#allocation5 + $0x28] sm:$0xff]  ;;  %v395_v14 = vmov 4   ;;  %v396_v15 = vmov 5   ;;  %v108_v17 = vld [vmem:[#allocation5 + $0x30] sm:$0xff]  ;;  %s405_s1 = smov [#allocation7]  }
  0x29   :  { %258 = vmatprep.subr.bf16.mxu0 %v392_v5  ;;  %v265_v16 = vpack.c.bf16 %v107_v13, %v106_v12  ;;  %v109_v18 = vld [vmem:[#allocation5 + $0x38] sm:$0xff]  ;;  %v397_v20 = vmov 6   ;;  %v398_v21 = vmov 8   ;;  %v110_v22 = vld [vmem:[#allocation5 + $0x40] sm:$0xff]  ;;  %v111_v23 = vld [vmem:[#allocation5 + $0x48] sm:$0xff]  ;;  %v399_v25 = vmov 7  }
  0x2a   :  { %260 = vmatpush3.bf16.msra.mxu0 %v259_v6  ;;  %v268_v19 = vpack.c.bf16 %v109_v18, %v108_v17  ;;  %v271_v24 = vpack.c.bf16 %v111_v23, %v110_v22  ;;  %v400_v26 = vmov 11   ;;  %v112_v27 = vld [vmem:[#allocation5 + $0x50] sm:$0xff]  ;;  %v113_v28 = vld [vmem:[#allocation5 + $0x58] sm:$0xff]  ;;  %v401_v30 = vmov 9   ;;  %v114_v31 = vld [vmem:[#allocation5 + $0x60] sm:$0xff]  ;;  %s195_s6 = sshll.u32 %s405_s1, 4  ;;  %s196_s6 = int_to_ptr.vmem [resolvable:$true] %s195_s6 }
  0x2b   :  { %261 = vmatprep.subr.bf16.mxu0 %v392_v5  ;;  %v274_v29 = vpack.c.bf16 %v113_v28, %v112_v27  ;;  %v115_v32 = vld [vmem:[#allocation5 + $0x68] sm:$0xff]  ;;  %v116_v34 = vld [vmem:[#allocation5 + $0x70] sm:$0xff]  ;;  %v117_v35 = vld [vmem:[#allocation5 + $0x78] sm:$0xff]  ;;  %v402_v36 = vmov 10   ;;  %vm403_vm0 = vmmov 0   ;;  %v404_v38 = vmov 0.0   ;;  %p363_p3 = scmp.lt.s32.totalorder %s196_s6, %s196_s6 }
  0x2c   :  { %305 = vset.pattern.permute.xlu1 %v393_v7  ;;  %303 = vset.pattern.permute.xlu0 %v394_v8  ;;  %v277_v33 = vpack.c.bf16 %v115_v32, %v114_v31  ;;  %v280_v37 = vpack.c.bf16 %v117_v35, %v116_v34  ;;  %v40_v44 = vand.u32 127, %v39_v42  ;;  %s358_s7 = scalar_lea.vmem %s196_s6, 128 }
  0x2d   :  { %56 = vperm.xlu1 %305, %v452_v2   ;;  %46 = vperm.xlu0 %303, %v452_v2   ;;  %p359_p2 = scmp.ne.s32.totalorder %s196_s6, %s358_s7  ;;  %p364_p4 = scmp.lt.s32.totalorder %s358_s7, %s358_s7 }
  0x2e   :  { %263 = vmatpush3.bf16.msra.mxu0 %v262_v11  ;;  %255 = vmatprep.mubr.msk.f32.mxu0 %vm403_vm0, %v404_v38 }
  0x2f   :  { %264 = vmatprep.subr.bf16.mxu0 %v392_v5  ;;  %p365_p5 = por %p364_p4, %p363_p3 }
  0x31   :  { %306 = vset.pattern.permute.xlu1 %v395_v14  ;;  %307 = vset.pattern.permute.xlu0 %v396_v15  ;;  %p366_p6 = pnand %p365_p5, %p359_p2 }
  0x32   :  { %61 = vperm.xlu1 %306, %v452_v2   ;;  %66 = vperm.xlu0 %307, %v452_v2  }
  0x33   :  { %266 = vmatpush3.bf16.msra.mxu0 %v265_v16 }
  0x34   :  { %267 = vmatprep.subr.bf16.mxu0 %v392_v5 }
  0x36   :  { %308 = vset.pattern.permute.xlu1 %v397_v20  ;;  %310 = vset.pattern.permute.xlu0 %v398_v21 }
  0x37   :  { %71 = vperm.xlu1 %308, %v452_v2   ;;  %81 = vperm.xlu0 %310, %v452_v2  }
  0x38   :  { %269 = vmatpush3.bf16.msra.mxu0 %v268_v19 }
  0x39   :  { %270 = vmatprep.subr.bf16.mxu0 %v392_v5 }
  0x3b   :  { %309 = vset.pattern.permute.xlu1 %v399_v25  ;;  %313 = vset.pattern.permute.xlu0 %v400_v26 }
  0x3c   :  { %76 = vperm.xlu1 %309, %v452_v2   ;;  %96 = vperm.xlu0 %313, %v452_v2  }
  0x3d   :  { %272 = vmatpush3.bf16.msra.mxu0 %v271_v24 }
  0x3e   :  { %273 = vmatprep.subr.bf16.mxu0 %v392_v5 }
  0x40   :  { %311 = vset.pattern.permute.xlu1 %v401_v30 }
  0x41   :  { %86 = vperm.xlu1 %311, %v452_v2   ;;  %275 = vmatpush3.bf16.msra.mxu0 %v274_v29 }
  0x42   :  { %276 = vmatprep.subr.bf16.mxu0 %v392_v5 }
  0x45   :  { %312 = vset.pattern.permute.xlu1 %v402_v36  ;;  %278 = vmatpush3.bf16.msra.mxu0 %v277_v33 }
  0x46   :  { %91 = vperm.xlu1 %312, %v452_v2   ;;  %279 = vmatprep.subr.bf16.mxu0 %v392_v5 }
  0x49   :  { %281 = vmatpush3.bf16.msra.mxu0 %v280_v37 }
  0xa7   :  { %v52_v39 = vpop.permute.xlu1 %51  ;;  %v43_v40 = vpop.permute.xlu0 %42 }
  0xa8   :  { %vm44_vm1 = vcmp.eq.s32.totalorder %v40_v44, %v43_v40  ;;  %vm53_vm4 = vcmp.eq.s32.totalorder %v40_v44, %v52_v39 }
  0xac   :  { %v57_v41 = vpop.permute.xlu1 %56  ;;  %v47_v43 = vpop.permute.xlu0 %46 }
  0xad   :  { %vm48_vm2 = vcmp.eq.s32.totalorder %v40_v44, %v47_v43  ;;  %vm58_vm7 = vcmp.eq.s32.totalorder %v40_v44, %v57_v41 }
  0xae   :  { %vm49_vm3 = vmor %vm44_vm1, %vm48_vm2 }
  0xaf   :  { %vm54_vm5 = vmor %vm49_vm3, %vm53_vm4 }
  0xb0   :  { %vm59_vm8 = vmor %vm54_vm5, %vm58_vm7 }
  0xb1   :  { %v62_v45 = vpop.permute.xlu1 %61  ;;  %v67_v47 = vpop.permute.xlu0 %66 }
  0xb2   :  { %vm63_vm6 = vcmp.eq.s32.totalorder %v40_v44, %v62_v45  ;;  %vm68_vm10 = vcmp.eq.s32.totalorder %v40_v44, %v67_v47 }
  0xb3   :  { %vm64_vm9 = vmor %vm59_vm8, %vm63_vm6 }
  0xb4   :  { %vm69_vm13 = vmor %vm64_vm9, %vm68_vm10 }
  0xb6   :  { %v72_v46 = vpop.permute.xlu1 %71  ;;  %v82_v49 = vpop.permute.xlu0 %81 }
  0xb7   :  { %vm73_vm11 = vcmp.eq.s32.totalorder %v40_v44, %v72_v46  ;;  %vm83_vm0 = vcmp.eq.s32.totalorder %v40_v44, %v82_v49 }
  0xb8   :  { %vm74_vm14 = vmor %vm69_vm13, %vm73_vm11 }
  0xbb   :  { %v77_v48 = vpop.permute.xlu1 %76  ;;  %v97_v51 = vpop.permute.xlu0 %96 }
  0xbc   :  { %vm78_vm12 = vcmp.eq.s32.totalorder %v40_v44, %v77_v48  ;;  %vm98_vm3 = vcmp.eq.s32.totalorder %v40_v44, %v97_v51 }
  0xbd   :  { %vm79_vm15 = vmor %vm74_vm14, %vm78_vm12 }
  0xbe   :  { %vm84_vm2 = vmor %vm79_vm15, %vm83_vm0 }
  0xc0   :  { %v87_v50 = vpop.permute.xlu1 %86 }
  0xc1   :  { %vm88_vm1 = vcmp.eq.s32.totalorder %v40_v44, %v87_v50 }
  0xc2   :  { %vm89_vm4 = vmor %vm84_vm2, %vm88_vm1 }
  0xc5   :  { %v92_v52 = vpop.permute.xlu1 %91 }
  0xc6   :  { %vm93_vm5 = vcmp.eq.s32.totalorder %v40_v44, %v92_v52 }
  0xc7   :  { %vm94_vm7 = vmor %vm89_vm4, %vm93_vm5 }
  0xc8   :  { %vm99_vm6 = vmor %vm94_vm7, %vm98_vm3 }
  0xc9   :  { %v205_v53 = vsel %vm99_vm6, 1.0, %v404_v38 }
  0xca   :  { %256 = vmatmul.mubr.f32.vlgmr.msra.gmra.mrb[0].mxu0 %v205_v53 }
 0x19d   :  { %v184_v54 = vpop.f32.mrb[0].mxu0 }
 0x19e   :  { %188 = vst [vmem:[#allocation7] sm:$0xff] %v184_v54  ;;  %v257_v55 = vpop.f32.mrb[1].mxu0 }
 0x19f   :  { %369 = shalt.err (!%p366_p6)
}
 0x1a0   :  { %s370_s10 = scalar_lea.hbm %s488_s2, 128 }
 0x1a1   :  { %p371_p7 = scmp.ne.s32.totalorder %s488_s2, %s370_s10  ;;  %p374_p8 = scmp.lt.u32.totalorder %s370_s10, %s488_s2 }
 0x1a3   :  { %p376_p9 = pnand %p374_p8, %p371_p7 }
 0x1a5   :  { %379 = shalt.err (!%p376_p9)
}
 0x1a6   :  { %198 = dma.vmem_to_hbm [thread:$0]  %s196_s6, 128, %s488_s2, [#allocation4]  }
 0x1a7   :  { %384 = dma.done.wait [#allocation4], 128  }
 0x1a8   :  { %385 = vsyncadd [#allocation4], 4294967168 }
 0x1a9   :  { %202 = vsyncpa [#allocation3], 1 }
 0x1aa   :  { %203 = vsyncpa [#allocation6], 1 }
 0x1ab   :  { %204 = vsyncpa [#allocation4], 1 }

</bundles_post_ra>
